<compile_context>
chip_gen: v5e
topology: v5e:2x2
jax: 0.10.0
libtpu: 0.0.40
codegen_flags: <defaults>
</compile_context>

<pallas_src>
import jax
import jax.numpy as jnp
from jax.experimental import pallas as pl
from jax.experimental.pallas import tpu as pltpu


def _maxpool_kernel(x_ref, o_ref, acc_ref):
    # x_ref  : (1, C, THW)  one spatial tile of one batch element
    # o_ref  : (1, C, 1)    per-batch pooled maxima (written on last step only)
    # acc_ref: (C, THW)     f32 running lane-wise max
    s = pl.program_id(1)

    @pl.when(s == 0)
    def _init():
        acc_ref[...] = jnp.full(acc_ref.shape, -jnp.inf, dtype=acc_ref.dtype)

    # Lane-wise running max: pure VPU elementwise work (no XLU in the inner loop).
    acc_ref[...] = jnp.maximum(acc_ref[...], x_ref[0].astype(jnp.float32))

    @pl.when(s == pl.num_programs(1) - 1)
    def _finalize():
        # Single cross-lane reduction per batch element; channels stay on sublanes
        # so no relayout is needed for the (1, C, 1) store.
        o_ref[...] = jnp.max(acc_ref[...], axis=-1, keepdims=True)[None]


def _csam_tail_kernel(pooled_ref, w1t_ref, w2t_ref, w7c_ref, o_ref):
    # pooled_ref: (N, C)    pooled maxima, lane-dense batch tile
    # w1t_ref   : (C, C16)  fc1 weight (transposed)
    # w2t_ref   : (C16, C)  fc2 weight (transposed)
    # w7c_ref   : (1,)      center tap of the 7x7 conv weight (SMEM scalar)
    # o_ref     : (N, 1)
    pooled = pooled_ref[...]
    h = jnp.dot(pooled, w1t_ref[...], preferred_element_type=jnp.float32)
    h = jnp.maximum(h, 0.0)
    att = jax.nn.sigmoid(
        jnp.dot(h, w2t_ref[...], preferred_element_type=jnp.float32))
    cmax = jnp.max(att, axis=-1, keepdims=True)                 # (N, 1)
    # 7x7 conv, padding=3, on a 1x1 spatial input: only the center tap contributes.
    conv = cmax * w7c_ref[0]
    o_ref[...] = jax.nn.sigmoid(conv)


def _pick_spatial_tile(HW, C, elem_bytes, budget_bytes=20 << 20):
    """Largest spatial tile (multiple of 128 dividing HW) fitting the VMEM budget."""
    if HW % 128 != 0:
        return HW                                  # odd spatial size: one full tile
    # bytes per spatial element: double-buffered x tile + f32 accumulator scratch
    per_elem = C * (2 * elem_bytes + 4)
    max_t = max(128, (budget_bytes // per_elem) // 128 * 128)
    if HW <= max_t:
        return HW
    best = 128
    for t in range(128, min(HW, max_t) + 1, 128):
        if HW % t == 0:
            best = t
    return best


def csam_forward(x_nchw, w_fc1, w_fc2, w_conv7):
    """x_nchw: (N, C, H, W). w_fc1: (C//16, C), w_fc2: (C, C//16), w_conv7: (7, 7).
    Returns (N, 1, 1, 1) float32."""
    N, C, H, W = x_nchw.shape
    HW = H * W
    x3 = x_nchw.reshape(N, C, HW)                  # keep native dtype (bf16 stays bf16)
    eb = x3.dtype.itemsize
    THW = _pick_spatial_tile(HW, C, eb)
    assert HW % THW == 0
    S = HW // THW

    # Stage 1: streaming global max pool (mem-bound part).
    pooled = pl.pallas_call(
        _maxpool_kernel,
        out_shape=jax.ShapeDtypeStruct((N, C, 1), jnp.float32),
        grid_spec=pltpu.PrefetchScalarGridSpec(
            num_scalar_prefetch=0,
            grid=(N, S),
            in_specs=[pl.BlockSpec((1, C, THW), lambda n, s: (n, 0, s))],
            out_specs=pl.BlockSpec((1, C, 1), lambda n, s: (n, 0, 0)),
            scratch_shapes=[pltpu.VMEM((C, THW), jnp.float32)],
        ),
        compiler_params=pltpu.CompilerParams(
            dimension_semantics=("parallel", "arbitrary"),
            vmem_limit_bytes=32 * 1024 * 1024,
        ),
        cost_estimate=pl.CostEstimate(
            flops=N * C * HW,
            transcendentals=0,
            bytes_accessed=N * C * HW * eb + N * C * 4,
        ),
    )(x3)

    # Stage 2: tiny lane-dense tail for the whole batch in one single-step kernel.
    pooled2 = pooled.reshape(N, C)
    w1t = w_fc1.astype(jnp.float32).T              # (C, C//16)
    w2t = w_fc2.astype(jnp.float32).T              # (C//16, C)
    w7c = w_conv7[3, 3].astype(jnp.float32).reshape((1,))

    out = pl.pallas_call(
        _csam_tail_kernel,
        out_shape=jax.ShapeDtypeStruct((N, 1), jnp.float32),
        in_specs=[
            pl.BlockSpec(memory_space=pltpu.MemorySpace.VMEM),
            pl.BlockSpec(memory_space=pltpu.MemorySpace.VMEM),
            pl.BlockSpec(memory_space=pltpu.MemorySpace.VMEM),
            pl.BlockSpec(memory_space=pltpu.MemorySpace.SMEM),
        ],
        out_specs=pl.BlockSpec(memory_space=pltpu.MemorySpace.VMEM),
    )(pooled2, w1t, w2t, w7c)

    return out.reshape(N, 1, 1, 1)


def _reference(x, w_fc1, w_fc2, w_conv7):
    # Pure-JAX reference of the same math (for a sanity check).
    pooled = jnp.max(x.astype(jnp.float32), axis=(2, 3))       # (N, C)
    h = jnp.maximum(pooled @ w_fc1.T, 0.0)                     # (N, C//16)
    att = jax.nn.sigmoid(h @ w_fc2.T)                          # (N, C)
    cmax = jnp.max(att, axis=1)                                # (N,)
    conv = cmax * w_conv7[3, 3]                                # center tap only
    return jax.nn.sigmoid(conv).reshape(-1, 1, 1, 1)


if __name__ == "__main__":
    # Small shapes consistent with the module: in_planes must allow //16.
    N, C, H, W = 2, 32, 16, 16
    C16 = C // 16

    key = jax.random.PRNGKey(0)
    kx, k1, k2, k3 = jax.random.split(key, 4)

    x = jax.random.normal(kx, (N, C, H, W), dtype=jnp.float32)
    # Conv2d weights reshaped to 2D (1x1 convs are pure matmuls; conv1 weight is
    # (1, 1, 7, 7) -> (7, 7)).
    w_fc1 = jax.random.normal(k1, (C16, C), dtype=jnp.float32) * 0.1
    w_fc2 = jax.random.normal(k2, (C, C16), dtype=jnp.float32) * 0.1
    w_conv7 = jax.random.normal(k3, (7, 7), dtype=jnp.float32) * 0.1

    y = csam_forward(x, w_fc1, w_fc2, w_conv7)
    jax.block_until_ready(y)

    y_ref = _reference(x, w_fc1, w_fc2, w_conv7)
    assert y.shape == (N, 1, 1, 1)
    assert jnp.allclose(y, y_ref, atol=1e-5, rtol=1e-5), (y, y_ref)

    print("KERNEL_OK")
</pallas_src>

<mosaic_0001>
module attributes {stable_mosaic.version = 11 : i64} {
  func.func @_maxpool_kernel(%arg0: i32, %arg1: i32, %arg2: memref<1x32x256xf32, #tpu.memory_space<vmem>>, %arg3: memref<1x32x1xf32, #tpu.memory_space<vmem>>, %arg4: memref<32x256xf32, #tpu.memory_space<vmem>>) attributes {dimension_semantics = [#tpu.dimension_semantics<parallel>, #tpu.dimension_semantics<arbitrary>], iteration_bounds = array<i64: 2, 1>, scalar_prefetch = 0 : i64, scratch_operands = 1 : i64, tpu.core_type = #tpu.core_type<tc>, window_params = [{transform_indices = @transform_0, window_bounds = array<i64: 1, 32, 256>}, {transform_indices = @transform_1, window_bounds = array<i64: 1, 32, 1>}]} {
    %c0_i32 = arith.constant 0 : i32
    %0 = arith.cmpi eq, %arg1, %c0_i32 : i32
    %1 = arith.extui %0 : i1 to i32
    %c0_i32_0 = arith.constant 0 : i32
    %2 = arith.cmpi ne, %1, %c0_i32_0 : i32
    scf.if %2 {
      %cst = arith.constant 0xFF800000 : f32
      %11 = vector.broadcast %cst : f32 to vector<32x256xf32>
      %c0_9 = arith.constant 0 : index
      %c0_10 = arith.constant 0 : index
      %12 = vector.load %arg4[%c0_9, %c0_10] : memref<32x256xf32, #tpu.memory_space<vmem>>, vector<32x256xf32>
      tpu.vector_store %arg4[%c0_9, %c0_10], %11 {strides = array<i32>} : memref<32x256xf32, #tpu.memory_space<vmem>>, vector<32x256xf32>,
    } else {
    }
    %c0 = arith.constant 0 : index
    %c0_1 = arith.constant 0 : index
    %3 = vector.load %arg4[%c0, %c0_1] : memref<32x256xf32, #tpu.memory_space<vmem>>, vector<32x256xf32>
    %c0_2 = arith.constant 0 : index
    %c0_3 = arith.constant 0 : index
    %c0_4 = arith.constant 0 : index
    %4 = vector.load %arg2[%c0_2, %c0_3, %c0_4] : memref<1x32x256xf32, #tpu.memory_space<vmem>>, vector<1x32x256xf32>
    %5 = vector.shape_cast %4 : vector<1x32x256xf32> to vector<32x256xf32>
    %6 = arith.maximumf %3, %5 : vector<32x256xf32>
    %c0_5 = arith.constant 0 : index
    %c0_6 = arith.constant 0 : index
    %7 = vector.load %arg4[%c0_5, %c0_6] : memref<32x256xf32, #tpu.memory_space<vmem>>, vector<32x256xf32>
    tpu.vector_store %arg4[%c0_5, %c0_6], %6 {strides = array<i32>} : memref<32x256xf32, #tpu.memory_space<vmem>>, vector<32x256xf32>,
    %c0_i32_7 = arith.constant 0 : i32
    %8 = arith.cmpi eq, %arg1, %c0_i32_7 : i32
    %9 = arith.extui %8 : i1 to i32
    %c0_i32_8 = arith.constant 0 : i32
    %10 = arith.cmpi ne, %9, %c0_i32_8 : i32
    scf.if %10 {
      %c0_9 = arith.constant 0 : index
      %c0_10 = arith.constant 0 : index
      %11 = vector.load %arg4[%c0_9, %c0_10] : memref<32x256xf32, #tpu.memory_space<vmem>>, vector<32x256xf32>
      %cst = arith.constant dense<0xFF800000> : vector<32xf32>
      %12 = vector.multi_reduction <maximumf>, %11, %cst [1] : vector<32x256xf32> to vector<32xf32>
      %13 = vector.shape_cast %12 : vector<32xf32> to vector<32x1xf32>
      %14 = vector.shape_cast %13 : vector<32x1xf32> to vector<1x32x1xf32>
      %c0_11 = arith.constant 0 : index
      %c0_12 = arith.constant 0 : index
      %c0_13 = arith.constant 0 : index
      %15 = vector.load %arg3[%c0_11, %c0_12, %c0_13] : memref<1x32x1xf32, #tpu.memory_space<vmem>>, vector<1x32x1xf32>
      tpu.vector_store %arg3[%c0_11, %c0_12, %c0_13], %14 {strides = array<i32>} : memref<1x32x1xf32, #tpu.memory_space<vmem>>, vector<1x32x1xf32>,
    } else {
    }
    return
  }
  func.func @transform_0(%arg0: i32, %arg1: i32) -> (i32, i32, i32) {
    %c0_i32 = arith.constant 0 : i32
    %c0_i32_0 = arith.constant 0 : i32
    return %arg0, %c0_i32, %arg1 : i32, i32, i32
  }
  func.func @transform_1(%arg0: i32, %arg1: i32) -> (i32, i32, i32) {
    %c0_i32 = arith.constant 0 : i32
    %c0_i32_0 = arith.constant 0 : i32
    %c0_i32_1 = arith.constant 0 : i32
    return %arg0, %c0_i32, %c0_i32_0 : i32, i32, i32
  }
}

</mosaic_0001>

<bundles_post_ra>
// kernel: tpu_custom_call.1
= control target key start
LH: loop header
LB: loop body
LE: loop exit
PB: predicated region body
PF: predicated region fallthrough
CT: control target
= control target key end

     0   :  { %6 = vsyncpa [#allocation4], 0  ;;  %s560_s0 = inlined_call_operand.hbm [shape: f32[2,32,256], index: 0, kind: input, shape index: {}]   ;;  %s561_s1 = inlined_call_operand.vmem [shape: f32[2,32,1], index: 1, kind: output, shape index: {}]  }
   0x1   :  { %8 = vsyncpa [#allocation4 + $0x1], 0  ;;  %s472_s6 = smov 0   ;;  %s474_s7 = smov 0  }
   0x2   :  { %s476_s8 = smov 0   ;;  %s478_s9 = smov 0  }
   0x3   :  { %s480_s10 = smov 0   ;;  %s482_s11 = smov 0  }
   0x4 LB: > { %s306_s12 = sadd.s32 4294967295, %s458_s11   ;;  %s26_s13 = sadd.s32 1, %s454_s10  ;;  %s458_s11 = sphi %s482_s11, %s14_s11   ;;  %s454_s10 = sphi %s480_s10, %s568_s10   ;;  %s450_s9 = sphi %s478_s9, %s567_s9   ;;  %s446_s8 = sphi %s476_s8, %s566_s8   ;;  %s442_s7 = sphi %s474_s7, %s565_s7   ;;  %s438_s6 = sphi %s472_s6, %s564_s6  }
   0x5   : > { %p28_p0 = scmp.ge.s32.totalorder %s26_s13, 2  ;;  %s35_s14 = sadd.s32 1, %s446_s8 }
   0x6   : > { %p42_p1 = scmp.ne.s32.totalorder %s446_s8, %s442_s7  ;;  %p43_p2 = scmp.eq.s32.totalorder %s458_s11, 0 }
   0x7   : > { %s570_s13 = smov (%p28_p0, %s26_s13), 0  ;;  %p48_p4 = scmp.ne.s32.totalorder %s442_s7, %s438_s6 }
   0x8   : > { %p508_p3 = por %p43_p2, %p42_p1  ;;  %s30_s16 = ssub.s32 %s454_s10, %s570_s13 }
   0x9   : > { %p49_p5 = scmp.eq.s32.totalorder %s306_s12, 0  ;;  %p33_p6 = scmp.eq.s32.totalorder %s30_s16, 0 }
   0xa   : > { %p327_p8 = scmp.lt.s32.totalorder %s458_s11, 2  ;;  %s98_s19 = sand.u32 1, %s446_s8  }
   0xb   : > { %p515_p7 = por %p49_p5, %p48_p4  ;;  %s319_s20 = sshll.u32 %s454_s10, 6 }
   0xc   : > { %s521_s18 = scalar_select %p33_p6, %s446_s8, %s35_s14  }
   0xd   : > { %s310_s21 = sshll.u32 %s98_s19, 6  ;;  %s109_s24 = scalar_lea.hbm %s560_s0, %s319_s20 }
   0xe   : > { %s110_s25 = sshll.u32 %s109_s24, 4  ;;  %s102_s26 = scalar_lea.vmem [#allocation3], %s310_s21  ;;  %s111_s25 = int_to_ptr.hbm [resolvable:$true] %s110_s25 }
   0xf   : > { %s112_s27 = sshll.u32 %s102_s26, 4  ;;  %p324_p9 = pnand %p327_p8, %p508_p3  ;;  %s113_s27 = int_to_ptr.vmem [resolvable:$true] %s112_s27 }
  0x10   : > { %p313_p10 = scmp.ge.s32.totalorder %s458_s11, 1  ;;  %p120_p11 = scmp.lt.s32.totalorder %s458_s11, 3 }
  0x11   : > { %s99_s28 = scalar_lea.sflag [#allocation4], %s98_s19  ;;  %s460_s29 = smov 256  }
  0x12   : > { %s461_s30 = smov 16   ;;  %p121_p12 = pnand %p313_p10, %p120_p11 }
  0x13   : > { %326 = dma.hbm_to_vmem [thread:$0]  (!%p324_p9), %s111_s25, 1024, %s113_s27, %s99_s28, %s460_s29, %s460_s29, %s461_s30  }
  0x14   : > { %124 = sbr.rel (%p121_p12) target bundleno = 155 (0x9b), region = 24  ;;  %s126_s2 = sand.u32 (!%p121_p12), 1, %s442_s7  }
  0x15   : > { %s314_s3 = sshll.u32 (!%p121_p12), %s126_s2, 6  ;;  %s127_s4 = scalar_lea.sflag (!%p121_p12), [#allocation4], %s126_s2 }
  0x16   : > { %s130_s5 = scalar_lea.vmem (!%p121_p12), [#allocation3], %s314_s3 }
  0x19   : > { %433 = dma.done.wait (%p515_p7), %s127_s4, 1024  }
  0x1a   : > { %435 = vsyncadd (%p515_p7), %s127_s4, 4294966272  ;;  %v180_v0 = vld [vmem:[%s130_s5 + $0x20] sm:$0xff]  ;;  %v181_v1 = vld [vmem:[%s130_s5 + $0x28] sm:$0xff]  ;;  %p151_p13 = scmp.lt.s32.totalorder %s450_s9, 1  ;;  %vm223_vm0 = vcmask 7168  }
  0x1b   : > { %v176_v2 = vld [vmem:[%s130_s5] sm:$0xff]  ;;  %v217_v3 = vmax.f32 %v180_v0, %v181_v1  ;;  %v177_v4 = vld [vmem:[%s130_s5 + $0x8] sm:$0xff]  ;;  %v182_v6 = vld [vmem:[%s130_s5 + $0x30] sm:$0xff] }
  0x1c   : > { %v211_v5 = vmax.f32 %v176_v2, %v177_v4  ;;  %v183_v7 = vld [vmem:[%s130_s5 + $0x38] sm:$0xff]  ;;  %v178_v8 = vld [vmem:[%s130_s5 + $0x10] sm:$0xff]  ;;  %s572_s9 = smov (!%p151_p13, %s450_s9), 1 }
  0x1d   : > { %218 = vmax.xlane.f32.xlu1 %v217_v3  ;;  %v179_v9 = vld [vmem:[%s130_s5 + $0x18] sm:$0xff]  ;;  %v220_v10 = vmax.f32 %v182_v6, %v183_v7  ;;  %s320_s6 = sshll.u32 %s572_s9, 5 }
  0x1e   : > { %212 = vmax.xlane.f32.xlu0 %v211_v5  ;;  %v214_v11 = vmax.f32 %v178_v8, %v179_v9  ;;  %s155_s15 = scalar_lea.vmem %s561_s1, %s320_s6 }
  0x25   : > { %221 = vmax.xlane.f32.xlu1 %v220_v10 }
  0x26   : > { %215 = vmax.xlane.f32.xlu0 %v214_v11 }
  0x90   : > { %v219_v12 = vpop.xlane.xlu1 %218 }
  0x91   : > { %226 = vst.msk [vmem:[%s155_s15 + $0x10] sm:$0xff] %vm223_vm0, %v219_v12  ;;  %v213_v13 = vpop.xlane.xlu0 %212 }
  0x92   : > { %224 = vst.msk [vmem:[%s155_s15] sm:$0xff] %vm223_vm0, %v213_v13 }
  0x98   : > { %v222_v14 = vpop.xlane.xlu1 %221 }
  0x99   : > { %227 = vst.msk [vmem:[%s155_s15 + $0x18] sm:$0xff] %vm223_vm0, %v222_v14  ;;  %v216_v15 = vpop.xlane.xlu0 %215 }
  0x9a   : > { %225 = vst.msk [vmem:[%s155_s15 + $0x8] sm:$0xff] %vm223_vm0, %v216_v15 }
  0x9b PF: > { %s14_s11 = sadd.s32 1, %s458_s11   ;;  %s564_s6 = smov %s442_s7 }
  0x9c   : > { %p11_p0 = scmp.ge.s32.totalorder %s14_s11, 4   ;;  %s565_s7 = smov %s446_s8 }
  0x9d   : > { %s566_s8 = smov %s521_s18  ;;  %s567_s9 = smov %s454_s10 }
  0x9e   : > { %s568_s10 = smov %s570_s13  ;;  %13 = sbr.rel (!%p11_p0) target bundleno = 4 (0x4), region = 72 }
  0xa3   :  { %249 = vsyncpa [#allocation4], 1 }
  0xa4   :  { %251 = vsyncpa [#allocation4 + $0x1], 1 }

</bundles_post_ra>
